<compile_context>
chip_gen: v6e
topology: v6e:2x2x1
jax: 0.10.0
libtpu: 0.0.40
codegen_flags: <defaults>
</compile_context>

<pallas_src>
import functools

import jax
import jax.numpy as jnp
from jax.experimental import pallas as pl
from jax.experimental.pallas import tpu as pltpu


def _round_up(x: int, m: int) -> int:
    return ((x + m - 1) // m) * m


def _fused_logreg_kernel(x_ref, w_ref, o_ref, *, feature_cats):
    """Fused one-hot encode + linear (bias folded in) for one batch tile.

    x_ref : (TILE_B, F)   raw feature columns (f32)
    w_ref : (D+1, C)      weight.T with bias appended as the last row
    o_ref : (TILE_B, C)   output logits (narrow, no lane padding in HBM)
    """
    x = x_ref[...]                               # (TB, F) f32
    tb = x.shape[0]
    d1 = w_ref.shape[0]                          # D + 1 (last row = bias)

    # Single lane-id iota, reused for every feature.
    lane = jax.lax.broadcasted_iota(jnp.int32, (tb, d1), 1)

    # Constant-1 bias column at the last slab position.
    slab = (lane == (d1 - 1)).astype(jnp.float32)

    off = 0
    for i, n_cats in enumerate(feature_cats):    # static python loop (unrolled)
        col = x[:, i:i + 1]                      # (TB, 1)
        if n_cats > 2:
            # One-hot block at lanes [off, off + n_cats).
            idx = col.astype(jnp.int32)                              # (TB, 1)
            in_range = jnp.logical_and(idx >= 0, idx < n_cats)
            target = jnp.where(in_range, idx + off, -1)              # (TB, 1)
            slab = slab + (lane == target).astype(jnp.float32)
            off += n_cats
        else:
            # Scalar column placed at lane `off`.
            slab = slab + jnp.where(lane == off, col, 0.0)
            off += 1

    # One MXU matmul, written directly to the (narrow) output block.
    o_ref[...] = jnp.dot(slab, w_ref[...], preferred_element_type=jnp.float32)


def logreg_forward(x, w_ext, feature_cats, num_classes, *, tile_b=2048):
    """y = encode(x) @ W.T + b, fused in one batch-tiled Pallas kernel.

    x     : (B, F)   raw feature columns (any float dtype)
    w_ext : (D+1, C) weight.T with the bias as the last row
    returns (B, num_classes) f32
    """
    x = x.astype(jnp.float32)
    B, F = x.shape
    D1, C = w_ext.shape
    assert C == num_classes

    # Large tile to amortize per-step overhead, but keep >= 2 grid steps so
    # both v7x TensorCores are used (the extra step is ~free on 1-TC chips).
    tile_b = max(8, min(tile_b, _round_up(pl.cdiv(B, 2), 8)))
    b_pad = _round_up(B, tile_b)
    if b_pad != B:
        x = jnp.pad(x, ((0, b_pad - B), (0, 0)))
    grid = (b_pad // tile_b,)

    kernel = functools.partial(_fused_logreg_kernel,
                               feature_cats=tuple(feature_cats))

    out = pl.pallas_call(
        kernel,
        out_shape=jax.ShapeDtypeStruct((b_pad, C), jnp.float32),
        grid=grid,
        in_specs=[
            pl.BlockSpec((tile_b, F), lambda i: (i, 0)),   # batch-tiled raw cols
            pl.BlockSpec((D1, C), lambda i: (0, 0)),       # resident weight+bias
        ],
        out_specs=pl.BlockSpec((tile_b, C), lambda i: (i, 0)),
        compiler_params=pltpu.CompilerParams(
            dimension_semantics=("parallel",)),
    )(x, w_ext)

    return out[:B] if b_pad != B else out


class LogisticRegressionClassifierPallas:
    def __init__(self, feature_cats, num_classes, key, tile_b=2048):
        self.feature_cats = list(feature_cats)
        self.num_classes = num_classes
        self.input_dim = sum(n if n > 2 else 1 for n in feature_cats)
        self.tile_b = tile_b

        k_w, k_b = jax.random.split(key)
        bound = 1.0 / float(self.input_dim) ** 0.5
        # nn.Linear-style params (kept for the reference check).
        self.weight = jax.random.uniform(
            k_w, (num_classes, self.input_dim), jnp.float32, -bound, bound)
        self.bias = jax.random.uniform(
            k_b, (num_classes,), jnp.float32, -bound, bound)

        # Static one-time prep: transpose to (D, C) and append the bias as an
        # extra row (matched in-kernel by a constant-1 slab column), so the
        # kernel does a single matmul with no per-call transpose or bias add.
        self.w_ext = jnp.concatenate(
            [self.weight.T, self.bias[None, :]], axis=0)   # (D+1, C)

    def __call__(self, x):
        return logreg_forward(x, self.w_ext, self.feature_cats,
                              self.num_classes, tile_b=self.tile_b)


if __name__ == "__main__":
    key = jax.random.PRNGKey(0)
    k_model, k_data = jax.random.split(key)

    feature_cats = [5, 2, 7, 3, 2]   # mixed categorical / scalar features
    num_classes = 4
    batch = 256                      # -> 2 grid steps (both v7x TCs busy)

    model = LogisticRegressionClassifierPallas(
        feature_cats, num_classes, k_model)

    # Build input: categorical features are integer indices in [0, n_cats),
    # scalar/binary features are raw floats kept as a single column.
    cols = []
    k = k_data
    for n_cats in feature_cats:
        k, sub = jax.random.split(k)
        if n_cats > 2:
            cols.append(jax.random.randint(sub, (batch,), 0, n_cats)
                        .astype(jnp.float32))
        else:
            cols.append(jax.random.uniform(sub, (batch,), jnp.float32))
    x = jnp.stack(cols, axis=1)  # (batch, num_features)

    out = jax.block_until_ready(model(x))
    assert out.shape == (batch, num_classes), out.shape

    # Pure-JAX reference (mirrors the PyTorch forward).
    feat_cols = []
    for i, n_cats in enumerate(feature_cats):
        if n_cats > 2:
            feat_cols.append(jax.nn.one_hot(x[:, i].astype(jnp.int32), n_cats,
                                            dtype=jnp.float32))
        else:
            feat_cols.append(x[:, i][:, None])
    feats = jnp.concatenate(feat_cols, axis=1)
    ref = jnp.dot(feats, model.weight.T,
                  precision=jax.lax.Precision.HIGHEST) + model.bias
    assert jnp.allclose(out, ref, atol=1e-5, rtol=1e-5), \
        float(jnp.max(jnp.abs(out - ref)))

    print("KERNEL_OK")
</pallas_src>

<mosaic_0001>
module attributes {stable_mosaic.version = 11 : i64} {
  func.func @_fused_logreg_kernel(%arg0: i32, %arg1: memref<128x5xf32, #tpu.memory_space<vmem>>, %arg2: memref<18x4xf32, #tpu.memory_space<vmem>>, %arg3: memref<128x4xf32, #tpu.memory_space<vmem>>) attributes {dimension_semantics = [#tpu.dimension_semantics<parallel>], iteration_bounds = array<i64: 2>, scalar_prefetch = 0 : i64, scratch_operands = 0 : i64, tpu.core_type = #tpu.core_type<tc>, window_params = [{transform_indices = @transform_0, window_bounds = array<i64: 128, 5>}, {pipeline_mode = #tpu.pipeline_mode<synchronous>, transform_indices = @transform_1, window_bounds = array<i64: 18, 4>}, {transform_indices = @transform_2, window_bounds = array<i64: 128, 4>}]} {
    %c0 = arith.constant 0 : index
    %c0_0 = arith.constant 0 : index
    %0 = vector.load %arg1[%c0, %c0_0] : memref<128x5xf32, #tpu.memory_space<vmem>>, vector<128x5xf32>
    %1 = tpu.iota {dimensions = array<i32: 1>} : vector<128x18xi32>
    %c17_i32 = arith.constant 17 : i32
    %2 = vector.broadcast %c17_i32 : i32 to vector<128x18xi32>
    %3 = arith.cmpi eq, %1, %2 : vector<128x18xi32>
    %4 = arith.extui %3 : vector<128x18xi1> to vector<128x18xi32>
    %5 = arith.sitofp %4 : vector<128x18xi32> to vector<128x18xf32>
    %6 = vector.extract_strided_slice %0 {offsets = [0, 0], sizes = [128, 1], strides = [1, 1]} : vector<128x5xf32> to vector<128x1xf32>
    %7 = arith.fptosi %6 : vector<128x1xf32> to vector<128x1xi32>
    %c0_i32 = arith.constant 0 : i32
    %8 = vector.broadcast %c0_i32 : i32 to vector<128x1xi32>
    %9 = arith.cmpi sge, %7, %8 : vector<128x1xi32>
    %c5_i32 = arith.constant 5 : i32
    %10 = vector.broadcast %c5_i32 : i32 to vector<128x1xi32>
    %11 = arith.cmpi slt, %7, %10 : vector<128x1xi32>
    %12 = arith.andi %9, %11 : vector<128x1xi1>
    %c0_i32_1 = arith.constant 0 : i32
    %13 = vector.broadcast %c0_i32_1 : i32 to vector<128x1xi32>
    %14 = arith.addi %7, %13 : vector<128x1xi32>
    %c-1_i32 = arith.constant -1 : i32
    %15 = vector.broadcast %c-1_i32 : i32 to vector<128x1xi32>
    %16 = arith.select %12, %14, %15 : vector<128x1xi1>, vector<128x1xi32>
    %17 = vector.broadcast %16 : vector<128x1xi32> to vector<128x18xi32>
    %18 = arith.cmpi eq, %1, %17 : vector<128x18xi32>
    %19 = arith.extui %18 : vector<128x18xi1> to vector<128x18xi32>
    %20 = arith.sitofp %19 : vector<128x18xi32> to vector<128x18xf32>
    %21 = arith.addf %5, %20 : vector<128x18xf32>
    %22 = vector.extract_strided_slice %0 {offsets = [0, 1], sizes = [128, 1], strides = [1, 1]} : vector<128x5xf32> to vector<128x1xf32>
    %c5_i32_2 = arith.constant 5 : i32
    %23 = vector.broadcast %c5_i32_2 : i32 to vector<128x18xi32>
    %24 = arith.cmpi eq, %1, %23 : vector<128x18xi32>
    %cst = arith.constant 0.000000e+00 : f32
    %25 = vector.shape_cast %22 : vector<128x1xf32> to vector<128x1xf32>
    %26 = vector.broadcast %25 : vector<128x1xf32> to vector<128x18xf32>
    %27 = vector.broadcast %cst : f32 to vector<128x18xf32>
    %28 = arith.select %24, %26, %27 : vector<128x18xi1>, vector<128x18xf32>
    %29 = arith.addf %21, %28 : vector<128x18xf32>
    %30 = vector.extract_strided_slice %0 {offsets = [0, 2], sizes = [128, 1], strides = [1, 1]} : vector<128x5xf32> to vector<128x1xf32>
    %31 = arith.fptosi %30 : vector<128x1xf32> to vector<128x1xi32>
    %c0_i32_3 = arith.constant 0 : i32
    %32 = vector.broadcast %c0_i32_3 : i32 to vector<128x1xi32>
    %33 = arith.cmpi sge, %31, %32 : vector<128x1xi32>
    %c7_i32 = arith.constant 7 : i32
    %34 = vector.broadcast %c7_i32 : i32 to vector<128x1xi32>
    %35 = arith.cmpi slt, %31, %34 : vector<128x1xi32>
    %36 = arith.andi %33, %35 : vector<128x1xi1>
    %c6_i32 = arith.constant 6 : i32
    %37 = vector.broadcast %c6_i32 : i32 to vector<128x1xi32>
    %38 = arith.addi %31, %37 : vector<128x1xi32>
    %c-1_i32_4 = arith.constant -1 : i32
    %39 = vector.broadcast %c-1_i32_4 : i32 to vector<128x1xi32>
    %40 = arith.select %36, %38, %39 : vector<128x1xi1>, vector<128x1xi32>
    %41 = vector.broadcast %40 : vector<128x1xi32> to vector<128x18xi32>
    %42 = arith.cmpi eq, %1, %41 : vector<128x18xi32>
    %43 = arith.extui %42 : vector<128x18xi1> to vector<128x18xi32>
    %44 = arith.sitofp %43 : vector<128x18xi32> to vector<128x18xf32>
    %45 = arith.addf %29, %44 : vector<128x18xf32>
    %46 = vector.extract_strided_slice %0 {offsets = [0, 3], sizes = [128, 1], strides = [1, 1]} : vector<128x5xf32> to vector<128x1xf32>
    %47 = arith.fptosi %46 : vector<128x1xf32> to vector<128x1xi32>
    %c0_i32_5 = arith.constant 0 : i32
    %48 = vector.broadcast %c0_i32_5 : i32 to vector<128x1xi32>
    %49 = arith.cmpi sge, %47, %48 : vector<128x1xi32>
    %c3_i32 = arith.constant 3 : i32
    %50 = vector.broadcast %c3_i32 : i32 to vector<128x1xi32>
    %51 = arith.cmpi slt, %47, %50 : vector<128x1xi32>
    %52 = arith.andi %49, %51 : vector<128x1xi1>
    %c13_i32 = arith.constant 13 : i32
    %53 = vector.broadcast %c13_i32 : i32 to vector<128x1xi32>
    %54 = arith.addi %47, %53 : vector<128x1xi32>
    %c-1_i32_6 = arith.constant -1 : i32
    %55 = vector.broadcast %c-1_i32_6 : i32 to vector<128x1xi32>
    %56 = arith.select %52, %54, %55 : vector<128x1xi1>, vector<128x1xi32>
    %57 = vector.broadcast %56 : vector<128x1xi32> to vector<128x18xi32>
    %58 = arith.cmpi eq, %1, %57 : vector<128x18xi32>
    %59 = arith.extui %58 : vector<128x18xi1> to vector<128x18xi32>
    %60 = arith.sitofp %59 : vector<128x18xi32> to vector<128x18xf32>
    %61 = arith.addf %45, %60 : vector<128x18xf32>
    %62 = vector.extract_strided_slice %0 {offsets = [0, 4], sizes = [128, 1], strides = [1, 1]} : vector<128x5xf32> to vector<128x1xf32>
    %c16_i32 = arith.constant 16 : i32
    %63 = vector.broadcast %c16_i32 : i32 to vector<128x18xi32>
    %64 = arith.cmpi eq, %1, %63 : vector<128x18xi32>
    %cst_7 = arith.constant 0.000000e+00 : f32
    %65 = vector.shape_cast %62 : vector<128x1xf32> to vector<128x1xf32>
    %66 = vector.broadcast %65 : vector<128x1xf32> to vector<128x18xf32>
    %67 = vector.broadcast %cst_7 : f32 to vector<128x18xf32>
    %68 = arith.select %64, %66, %67 : vector<128x18xi1>, vector<128x18xf32>
    %69 = arith.addf %61, %68 : vector<128x18xf32>
    %c0_8 = arith.constant 0 : index
    %c0_9 = arith.constant 0 : index
    %70 = vector.load %arg2[%c0_8, %c0_9] : memref<18x4xf32, #tpu.memory_space<vmem>>, vector<18x4xf32>
    %cst_10 = arith.constant dense<0.000000e+00> : vector<128x4xf32>
    %71 = tpu.matmul %69, %70, %cst_10 {dimension_numbers = #tpu.dot_dimension_numbers<[1], [0], [0], [1], [0, 0, 1, 1], [], []>} : vector<128x18xf32>, vector<18x4xf32>, vector<128x4xf32> -> vector<128x4xf32>
    %c0_11 = arith.constant 0 : index
    %c0_12 = arith.constant 0 : index
    %72 = vector.load %arg3[%c0_11, %c0_12] : memref<128x4xf32, #tpu.memory_space<vmem>>, vector<128x4xf32>
    tpu.vector_store %arg3[%c0_11, %c0_12], %71 {strides = array<i32>} : memref<128x4xf32, #tpu.memory_space<vmem>>, vector<128x4xf32>,
    return
  }
  func.func @transform_0(%arg0: i32) -> (i32, i32) {
    %c0_i32 = arith.constant 0 : i32
    %c0_i32_0 = arith.constant 0 : i32
    return %arg0, %c0_i32 : i32, i32
  }
  func.func @transform_1(%arg0: i32) -> (i32, i32) {
    %c0_i32 = arith.constant 0 : i32
    %c0_i32_0 = arith.constant 0 : i32
    %c0_i32_1 = arith.constant 0 : i32
    return %c0_i32, %c0_i32_0 : i32, i32
  }
  func.func @transform_2(%arg0: i32) -> (i32, i32) {
    %c0_i32 = arith.constant 0 : i32
    %c0_i32_0 = arith.constant 0 : i32
    return %arg0, %c0_i32 : i32, i32
  }
}

</mosaic_0001>

<bundles_post_ra>
// kernel: tpu_custom_call.1
= control target key start
LH: loop header
LB: loop body
LE: loop exit
PB: predicated region body
PF: predicated region fallthrough
CT: control target
= control target key end

     0   :  { %s1442_s9 = smov 0   ;;  %s2471_s0 = inlined_call_operand.vmem [shape: f32[256,5], index: 0, kind: input, shape index: {}]   ;;  %s2472_s1 = inlined_call_operand.vmem [shape: f32[18,4], index: 1, kind: input, shape index: {}]   ;;  %s2473_s2 = inlined_call_operand.vmem [shape: f32[256,4], index: 2, kind: output, shape index: {}]  }
   0x1 LB: > { %s1196_s10 = sadd.s32 4294967295, %s1419_s9   ;;  %p1200_p0 = scmp.ge.s32.totalorder %s1419_s9, 1  ;;  %s1419_s9 = sphi %s1442_s9, %s12_s9  }
   0x2   : > { %p113_p1 = scmp.lt.s32.totalorder %s1419_s9, 3 }
   0x4   : > { %p114_p2 = pnand %p1200_p0, %p113_p1 }
   0x5   : > { %s1201_s11 = sshll.u32 (!%p114_p2), %s1196_s10, 4 }
   0x6   : > { %117 = sbr.rel (%p114_p2) target bundleno = 574 (0x23e), region = 28  ;;  %p136_p3 = scmp.lt.s32.totalorder (!%p114_p2), %s1201_s11, 31 }
   0xb   : > { %v1421_v0 = vmov 0   ;;  %s2582_s11 = smov (!%p136_p3, %s1201_s11), 31  ;;  %v1422_v56 = vmov 1   ;;  %v1423_v43 = vmov 2  }
   0xc   : > { %1375 = vset.pattern.permute.xlu1 %v1421_v0  ;;  %1374 = vset.pattern.permute.xlu0 %v1421_v0  ;;  %s1202_s12 = sshll.u32 %s2582_s11, 3 }
   0xd   : > { %s1460_s15 = scalar_lea.vmem %s2471_s0, %s1202_s12  ;;  %s2434_s24 = scalar_lea.vmem %s2473_s2, %s1202_s12 }
   0xe   : > { %v1463_v1 = vld [vmem:[%s1460_s15 + $0x10] sm:$0xff]  ;;  %v1466_v2 = vld [vmem:[%s1460_s15] sm:$0xff]  ;;  %v1469_v3 = vld [vmem:[%s1460_s15 + $0x18] sm:$0xff] }
   0xf   : > { %v1332_v4 = vtrunc.f32 %v1463_v1  ;;  %v1328_v5 = vtrunc.f32 %v1466_v2  ;;  %v1334_v6 = vtrunc.f32 %v1469_v3  ;;  %v1475_v7 = vld [vmem:[%s1460_s15 + $0x8] sm:$0xff]  ;;  %v1481_v9 = vld [vmem:[%s1460_s15 + $0x20] sm:$0xff]  ;;  %v1487_v13 = vld [vmem:[%s1460_s15 + $0x38] sm:$0xff] }
  0x10   : > { %v1478_v8 = vld [vmem:[%s1460_s15 + $0x28] sm:$0xff]  ;;  %v1330_v10 = vtrunc.f32 %v1475_v7  ;;  %v1336_v12 = vtrunc.f32 %v1481_v9  ;;  %v1490_v14 = vld [vmem:[%s1460_s15 + $0x30] sm:$0xff]  ;;  %v1342_v18 = vtrunc.f32 %v1487_v13  ;;  %v1520_v24 = vld [vmem:[%s1460_s15 + $0x40] sm:$0xff] }
  0x11   : > { %v1338_v11 = vtrunc.f32 %v1478_v8  ;;  %v1492_v15 = vcvt.f32.s32 %v1332_v4  ;;  %v1494_v16 = vcvt.f32.s32 %v1328_v5  ;;  %v1496_v17 = vcvt.f32.s32 %v1334_v6  ;;  %v1517_v23 = vld [vmem:[%s1460_s15 + $0x48] sm:$0xff]  ;;  %v1550_v33 = vld [vmem:[%s1460_s15 + $0x60] sm:$0xff]  ;;  %v1580_v41 = vld [vmem:[%s1460_s15 + $0x78] sm:$0xff] }
  0x12   : > { %v1499_v19 = vcvt.f32.s32 %v1330_v10  ;;  %v1503_v21 = vcvt.f32.s32 %v1336_v12  ;;  %v1340_v22 = vtrunc.f32 %v1490_v14  ;;  %v1536_v28 = vcvt.f32.s32 %v1342_v18  ;;  %v1592_v44 = vld [vmem:[%s1460_s15 + $0x50] sm:$0xff]  ;;  %v1639_v57 = vld [vmem:[%s1460_s15 + $0x58] sm:$0xff] }
  0x13   : > { %v1501_v20 = vcvt.f32.s32 %v1338_v11  ;;  %vm2485_vm0 = vcmp.ge.s32.totalorder %v1492_v15, 0  ;;  %vm202_vm1 = vcmp.lt.s32.totalorder %v1492_v15, 5  ;;  %vm2479_vm2 = vcmp.ge.s32.totalorder %v1494_v16, 0 }
  0x14   : > { %vm200_vm3 = vcmp.lt.s32.totalorder %v1494_v16, 5  ;;  %vm218_vm4 = vmand %vm2485_vm0, %vm202_vm1  ;;  %vm2484_vm5 = vcmp.ge.s32.totalorder %v1496_v17, 0  ;;  %vm203_vm6 = vcmp.lt.s32.totalorder %v1496_v17, 5  ;;  %vm2475_vm7 = vcmp.ge.s32.totalorder %v1499_v19, 0 }
  0x15   : > { %vm201_vm8 = vcmp.lt.s32.totalorder %v1499_v19, 5  ;;  %v234_v25 = vsel %vm218_vm4, %v1492_v15, 4294967295  ;;  %vm216_vm9 = vmand %vm2479_vm2, %vm200_vm3  ;;  %vm2481_vm10 = vcmp.ge.s32.totalorder %v1501_v20, 0  ;;  %vm205_vm11 = vcmp.lt.s32.totalorder %v1501_v20, 5 }
  0x16   : > { %vm188_vm12 = vcmp.ge.s32.totalorder %v1503_v21, 0  ;;  %255 = vperm.xlu1 %1375, %v234_v25   ;;  %v232_v26 = vsel %vm216_vm9, %v1494_v16, 4294967295  ;;  %vm1531_vm13 = vmand %vm2484_vm5, %vm203_vm6  ;;  %vm204_vm14 = vcmp.lt.s32.totalorder %v1503_v21, 5  ;;  %v1538_v29 = vcvt.f32.s32 %v1340_v22 }
  0x17   : > { %249 = vperm.xlu0 %1374, %v232_v26   ;;  %v235_v30 = vsel %vm1531_vm13, %v1496_v17, 4294967295  ;;  %vm217_vm15 = vmand %vm2475_vm7, %vm201_vm8  ;;  %v1346_v31 = vtrunc.f32 %v1517_v23  ;;  %v1344_v32 = vtrunc.f32 %v1520_v24  ;;  %vm2482_vm4 = vcmp.ge.s32.totalorder %v1536_v28, 0 }
  0x18   : > { %v233_v34 = vsel %vm217_vm15, %v1499_v19, 4294967295  ;;  %vm1557_vm1 = vmand %vm2481_vm10, %vm205_vm11  ;;  %vm207_vm6 = vcmp.lt.s32.totalorder %v1536_v28, 5  ;;  %vm2474_vm8 = vcmp.ge.s32.totalorder %v1538_v29, 0  ;;  %vm206_vm9 = vcmp.lt.s32.totalorder %v1538_v29, 5 }
  0x19   : > { %vm1563_vm3 = vmand %vm188_vm12, %vm204_vm14  ;;  %v1569_v37 = vcvt.f32.s32 %v1346_v31  ;;  %v1573_v38 = vcvt.f32.s32 %v1344_v32  ;;  %v1352_v39 = vtrunc.f32 %v1550_v33  ;;  %v237_v40 = vsel %vm1557_vm1, %v1501_v20, 4294967295 }
  0x1a   : > { %258 = vperm.xlu1 %1375, %v235_v30   ;;  %v236_v42 = vsel %vm1563_vm3, %v1503_v21, 4294967295  ;;  %vm1587_vm11 = vmand %vm2482_vm4, %vm207_vm6  ;;  %v1358_v47 = vtrunc.f32 %v1580_v41  ;;  %v1348_v49 = vtrunc.f32 %v1592_v44  ;;  %v1644_v58 = vadd.s32 13, %v1494_v16 }
  0x1b   : > { %252 = vperm.xlu0 %1374, %v233_v34   ;;  %vm1596_vm13 = vmand %vm2474_vm8, %vm206_vm9  ;;  %vm2476_vm14 = vcmp.ge.s32.totalorder %v1569_v37, 0  ;;  %vm209_vm15 = vcmp.lt.s32.totalorder %v1569_v37, 5  ;;  %vm2480_vm1 = vcmp.ge.s32.totalorder %v1573_v38, 0  ;;  %vm208_vm3 = vcmp.lt.s32.totalorder %v1573_v38, 5 }
  0x1c   : > { %v1604_v46 = vcvt.f32.s32 %v1352_v39  ;;  %v239_v48 = vsel %vm1587_vm11, %v1536_v28, 4294967295  ;;  %v238_v50 = vsel %vm1596_vm13, %v1538_v29, 4294967295  ;;  %vm225_vm6 = vmand %vm2476_vm14, %vm209_vm15  ;;  %v1620_v51 = vcvt.f32.s32 %v1358_v47 }
  0x1d   : > { %vm224_vm9 = vmand %vm2480_vm1, %vm208_vm3  ;;  %v241_v52 = vsel %vm225_vm6, %v1569_v37, 4294967295  ;;  %v1623_v53 = vcvt.f32.s32 %v1348_v49  ;;  %v1350_v61 = vtrunc.f32 %v1639_v57  ;;  %v1668_v6 = vadd.s32 13, %v1492_v15 }
  0x1e   : > { %264 = vperm.xlu1 %1375, %v237_v40   ;;  %vm196_vm8 = vcmp.ge.s32.totalorder %v1604_v46, 0  ;;  %vm212_vm7 = vcmp.lt.s32.totalorder %v1604_v46, 5  ;;  %v240_v54 = vsel %vm224_vm9, %v1573_v38, 4294967295  ;;  %vm2478_vm13 = vcmp.ge.s32.totalorder %v1620_v51, 0 }
  0x1f   : > { %261 = vperm.xlu0 %1374, %v236_v42   ;;  %vm228_vm11 = vmand %vm196_vm8, %vm212_vm7  ;;  %vm215_vm15 = vcmp.lt.s32.totalorder %v1620_v51, 5  ;;  %vm2477_vm3 = vcmp.ge.s32.totalorder %v1623_v53, 0  ;;  %vm210_vm14 = vcmp.lt.s32.totalorder %v1623_v53, 5  ;;  %vm649_vm9 = vcmp.lt.s32.totalorder %v1494_v16, 3 }
  0x20   : > { %v244_v55 = vsel %vm228_vm11, %v1604_v46, 4294967295  ;;  %vm231_vm6 = vmand %vm2478_vm13, %vm215_vm15  ;;  %v1661_v4 = vadd.s32 13, %v1604_v46  ;;  %vm481_vm15 = vcmp.lt.s32.totalorder %v1573_v38, 7  ;;  %v1664_v5 = vcvt.f32.s32 %v1350_v61 }
  0x21   : > { %vm226_vm7 = vmand %vm2477_vm3, %vm210_vm14  ;;  %v247_v59 = vsel %vm231_vm6, %v1620_v51, 4294967295  ;;  %vm661_vm14 = vcmp.lt.s32.totalorder %v1604_v46, 3  ;;  %vm651_vm6 = vcmp.lt.s32.totalorder %v1492_v15, 3  ;;  %v513_v10 = vadd.s32 6, %v1573_v38 }
  0x22   : > { %270 = vperm.xlu1 %1375, %v239_v48   ;;  %v242_v60 = vsel %vm226_vm7, %v1623_v53, 4294967295  ;;  %vm1651_vm11 = vmand %vm2479_vm2, %vm649_vm9  ;;  %vm656_vm9 = vcmp.lt.s32.totalorder %v1536_v28, 3  ;;  %v1680_v12 = vadd.s32 13, %v1536_v28  ;;  %v1695_v25 = vadd.s32 13, %v1496_v17 }
  0x23   : > { %267 = vperm.xlu0 %1374, %v238_v50   ;;  %v697_v63 = vsel %vm1651_vm11, %v1644_v58, 4294967295  ;;  %vm1674_vm7 = vmand %vm196_vm8, %vm661_vm14  ;;  %vm652_vm14 = vcmp.lt.s32.totalorder %v1496_v17, 3  ;;  %vm2483_vm13 = vcmp.ge.s32.totalorder %v1664_v5, 0  ;;  %vm211_vm2 = vcmp.lt.s32.totalorder %v1664_v5, 5 }
  0x24   : > { %vm1686_vm3 = vmand %vm2480_vm1, %vm481_vm15  ;;  %v709_v22 = vsel %vm1674_vm7, %v1661_v4, 4294967295  ;;  %vm477_vm10 = vcmp.lt.s32.totalorder %v1503_v21, 7  ;;  %v1719_v31 = vadd.s32 6, %v1503_v21  ;;  %v1734_v36 = vadd.s32 6, %v1604_v46  ;;  %v922_v4 = vld [vmem:[%s2472_s1] sm:$0xff] }
  0x25   : > { %vm1704_vm15 = vmand %vm2485_vm0, %vm651_vm6  ;;  %v529_v32 = vsel %vm1686_vm3, %v513_v10, 4294967295  ;;  %v1748_v42 = vadd.s32 6, %v1501_v20  ;;  %v1768_v49 = vadd.s32 13, %v1503_v21  ;;  %v689_v18 = vadd.s32 13, %v1573_v38 }
  0x26   : > { %276 = vperm.xlu1 %1375, %v241_v52   ;;  %v699_v27 = vsel %vm1704_vm15, %v1668_v6, 4294967295  ;;  %vm1713_vm1 = vmand %vm2482_vm4, %vm656_vm9  ;;  %vm485_vm9 = vcmp.lt.s32.totalorder %v1604_v46, 7  ;;  %v2520_v46 = vmov 0  ;;  %v2529_v39 = vmov 0 }
  0x27   : > { %273 = vperm.xlu0 %1374, %v240_v54   ;;  %v704_v34 = vsel %vm1713_vm1, %v1680_v12, 4294967295  ;;  %vm1728_vm6 = vmand %vm2484_vm5, %vm652_vm14  ;;  %vm478_vm14 = vcmp.lt.s32.totalorder %v1501_v20, 7  ;;  %vm2519_vm5 = vcmp.ge.s32.totalorder %v1501_v20, 0  ;;  %v506_v54 = vadd.s32 6, %v1499_v19 }
  0x28   : > { %vm1739_vm3 = vmand %vm2483_vm13, %vm211_vm2  ;;  %v700_v40 = vsel %vm1728_vm6, %v1695_v25, 4294967295  ;;  %vm653_vm13 = vcmp.lt.s32.totalorder %v1503_v21, 3  ;;  %v1803_v21 = vld [vmem:[%s1460_s15 + $0x68] sm:$0xff]  ;;  %v682_v10 = vadd.s32 13, %v1499_v19  ;;  %v507_v50 = vadd.s32 6, %v1492_v15 }
  0x29   : > { %vm1753_vm4 = vmand %vm188_vm12, %vm477_vm10  ;;  %vm482_vm10 = vcmp.lt.s32.totalorder %v1569_v37, 7  ;;  %v243_v52 = vsel %vm1739_vm3, %v1664_v5, 4294967295  ;;  %vm657_vm3 = vcmp.lt.s32.totalorder %v1573_v38, 3  ;;  %v163_v25 = vlaneseq }
  0x2a   : > { %1376 = vset.pattern.permute.xlu1 %v1422_v56  ;;  %v525_v47 = vsel %vm1753_vm4, %v1719_v31, 4294967295  ;;  %vm1762_vm2 = vmand %vm196_vm8, %vm485_vm9 }
  0x2b   : > { %285 = vperm.xlu0 %1374, %v244_v55   ;;  %403 = vperm.xlu1 %1376, %v1520_v24   ;;  %vm1776_vm0 = vmand %vm2519_vm5, %vm478_vm14  ;;  %v514_v55 = vadd.s32 6, %v1569_v37  ;;  %vm2524_vm5 = vcmp.ge.s32.totalorder %v1569_v37, 0  ;;  %vm654_vm14 = vcmp.lt.s32.totalorder %v1501_v20, 3 }
  0x2c   : > { %v2521_v46 = vsel %vm1776_vm0, 4294967295, %v2520_v46  ;;  %vm1790_vm8 = vmand %vm188_vm12, %vm653_vm13  ;;  %vm2525_vm12 = vcmp.ge.s32.totalorder %v1573_v38, 0 }
  0x2d   : > { %vm498_vm9 = vmand %vm2524_vm5, %vm482_vm10  ;;  %vm2528_vm10 = vcmp.ge.s32.totalorder %v1501_v20, 0  ;;  %vm2568_vm4 = vnez %v2521_v46 }
  0x2e   : > { %v530_v61 = vsel %vm498_vm9, %v514_v55, 4294967295  ;;  %vm1807_vm13 = vmand %vm2525_vm12, %vm657_vm3  ;;  %vm473_vm9 = vcmp.lt.s32.totalorder %v1494_v16, 7  ;;  %vm2531_vm3 = vcmp.ge.s32.totalorder %v1494_v16, 0  ;;  %v2569_v30 = vsel %vm2568_vm4, %v1748_v42, 4294967295 }
  0x2f   : > { %294 = vperm.xlu0 %1374, %v247_v59   ;;  %1377 = vset.pattern.permute.xlu1 %v1421_v0  ;;  %v2522_v59 = vmov 0  ;;  %vm1819_vm5 = vmand %vm2528_vm10, %vm654_vm14  ;;  %v705_v55 = vsel %vm1807_vm13, %v689_v18, 4294967295  ;;  %vm474_vm14 = vcmp.lt.s32.totalorder %v1499_v19, 7  ;;  %vm650_vm13 = vcmp.lt.s32.totalorder %v1499_v19, 3 }
  0x30   : > { %279 = vperm.xlu1 %1377, %v242_v60   ;;  %v2523_v59 = vsel %vm1790_vm8, 4294967295, %v2522_v59  ;;  %v2530_v39 = vsel %vm1819_vm5, 4294967295, %v2529_v39  ;;  %vm489_vm12 = vmand %vm2531_vm3, %vm473_vm9  ;;  %v1424_v60 = vmov 3   ;;  %vm2532_vm10 = vcmp.ge.s32.totalorder %v1499_v19, 0 }
  0x31   : > { %vm1844_vm5 = vmand %vm2532_vm10, %vm474_vm14  ;;  %vm475_vm9 = vcmp.lt.s32.totalorder %v1492_v15, 7  ;;  %vm658_vm14 = vcmp.lt.s32.totalorder %v1569_v37, 3  ;;  %v690_v19 = vadd.s32 13, %v1569_v37  ;;  %vm2577_vm4 = vcmp.ge.s32.totalorder %v1538_v29, 0 }
  0x32   : > { %vm2535_vm3 = vmmov %vm2532_vm10  ;;  %vm2538_vm10 = vcmp.ge.s32.totalorder %v1492_v15, 0 }
  0x33   : > { %1397 = vset.pattern.permute.xlu0 %v1422_v56  ;;  %vm1867_vm8 = vmand %vm2538_vm10, %vm475_vm9 }
  0x34   : > { %363 = vperm.xlu0 %1397, %v1466_v2   ;;  %1378 = vset.pattern.permute.xlu1 %v1422_v56 }
  0x35   : > { %408 = vperm.xlu1 %1378, %v1517_v23  }
  0x38   : > { %368 = vperm.xlu0 %1397, %v1475_v7  }
  0x39   : > { %1379 = vset.pattern.permute.xlu1 %v1423_v43 }
  0x3a   : > { %562 = vperm.xlu1 %1379, %v529_v32   ;;  %v1814_v32 = vadd.s32 13, %v1501_v20  ;;  %v505_v20 = vadd.s32 6, %v1494_v16  ;;  %v1354_v16 = vtrunc.f32 %v1803_v21 }
  0x3c   : > { %413 = vperm.xlu0 %1397, %v1592_v44   ;;  %v521_v38 = vsel %vm489_vm12, %v505_v20, 4294967295  ;;  %vm1856_vm12 = vmand %vm2535_vm3, %vm650_vm13  ;;  %v522_v20 = vsel %vm1844_vm5, %v506_v54, 4294967295  ;;  %vm476_vm13 = vcmp.lt.s32.totalorder %v1496_v17, 7  ;;  %vm2541_vm3 = vcmp.ge.s32.totalorder %v1569_v37, 0 }
  0x3d   : > { %vm1877_vm0 = vmand %vm2541_vm3, %vm658_vm14  ;;  %v523_v37 = vsel %vm1867_vm8, %v507_v50, 4294967295  ;;  %vm479_vm3 = vcmp.lt.s32.totalorder %v1538_v29, 7  ;;  %vm2547_vm8 = vcmp.ge.s32.totalorder %v1536_v28, 0  ;;  %v2548_v50 = vmov 0 }
  0x3e   : > { %1380 = vset.pattern.permute.xlu1 %v1421_v0 }
  0x3f   : > { %282 = vperm.xlu1 %1380, %v243_v52   ;;  %v1829_v52 = vld [vmem:[%s1460_s15 + $0x70] sm:$0xff] }
  0x40   : > { %383 = vperm.xlu0 %1397, %v1481_v9  }
  0x43   : > { %1381 = vset.pattern.permute.xlu1 %v1423_v43 }
  0x44   : > { %428 = vperm.xlu0 %1397, %v1803_v21   ;;  %565 = vperm.xlu1 %1381, %v530_v61   ;;  %v1356_v61 = vtrunc.f32 %v1829_v52 }
  0x46   : > { %v1851_v18 = vcvt.f32.s32 %v1356_v61  ;;  %v698_v61 = vsel %vm1856_vm12, %v682_v10, 4294967295  ;;  %v508_v10 = vadd.s32 6, %v1496_v17  ;;  %vm2546_vm12 = vcmp.ge.s32.totalorder %v1496_v17, 0 }
  0x47   : > { %vm492_vm14 = vmand %vm2546_vm12, %vm476_vm13  ;;  %v511_v17 = vadd.s32 6, %v1538_v29  ;;  %vm488_vm12 = vcmp.lt.s32.totalorder %v1620_v51, 7 }
  0x48   : > { %393 = vperm.xlu0 %1397, %v1490_v14   ;;  %1382 = vset.pattern.permute.xlu1 %v1424_v60  ;;  %vm2489_vm5 = vcmp.ge.s32.totalorder %v1851_v18, 0  ;;  %vm487_vm9 = vcmp.lt.s32.totalorder %v1851_v18, 7  ;;  %v1884_v15 = vadd.s32 6, %v1851_v18  ;;  %vm214_vm1 = vcmp.lt.s32.totalorder %v1851_v18, 5 }
  0x49   : > { %738 = vperm.xlu1 %1382, %v705_v55   ;;  %vm1888_vm10 = vmand %vm2489_vm5, %vm487_vm9  ;;  %vm480_vm9 = vcmp.lt.s32.totalorder %v1536_v28, 7  ;;  %v692_v55 = vadd.s32 13, %v1664_v5  ;;  %vm2565_vm7 = vcmp.ge.s32.totalorder %v1851_v18, 0 }
  0x4a   : > { %vm1910_vm5 = vmand %vm2547_vm8, %vm480_vm9  ;;  %vm483_vm8 = vcmp.lt.s32.totalorder %v1623_v53, 7 }
  0x4b   : > { %v2549_v50 = vsel %vm1910_vm5, 4294967295, %v2548_v50  ;;  %vm230_vm15 = vmand %vm2565_vm7, %vm214_vm1  ;;  %vm2572_vm1 = vnez %v2530_v39 }
  0x4c   : > { %1401 = vset.pattern.permute.xlu0 %v1423_v43 }
  0x4d   : > { %538 = vperm.xlu0 %1401, %v521_v38   ;;  %1383 = vset.pattern.permute.xlu1 %v1422_v56  ;;  %v1906_v38 = vadd.s32 6, %v1536_v28 }
  0x4e   : > { %373 = vperm.xlu1 %1383, %v1463_v1  }
  0x51   : > { %541 = vperm.xlu0 %1401, %v522_v20   ;;  %v706_v20 = vsel %vm1877_vm0, %v690_v19, 4294967295  ;;  %vm2550_vm0 = vcmp.ge.s32.totalorder %v1538_v29, 0  ;;  %v515_v19 = vadd.s32 6, %v1623_v53 }
  0x52   : > { %1384 = vset.pattern.permute.xlu1 %v1424_v60  ;;  %vm495_vm13 = vmand %vm2550_vm0, %vm479_vm3  ;;  %vm2552_vm3 = vcmp.ge.s32.totalorder %v1623_v53, 0 }
  0x53   : > { %717 = vperm.xlu1 %1384, %v698_v61   ;;  %v524_v61 = vsel %vm492_vm14, %v508_v10, 4294967295  ;;  %v527_v28 = vsel %vm495_vm13, %v511_v17, 4294967295  ;;  %vm2551_vm14 = vcmp.ge.s32.totalorder %v1620_v51, 0  ;;  %v1928_v10 = vcvt.f32.s32 %v1354_v16  ;;  %vm1933_vm0 = vmand %vm2552_vm3, %vm483_vm8  ;;  %v924_v16 = vld [vmem:[%s2472_s1 + $0x10] sm:$0x3] }
  0x54   : > { %vm504_vm9 = vmand %vm2551_vm14, %vm488_vm12  ;;  %vm659_vm13 = vcmp.lt.s32.totalorder %v1623_v53, 3  ;;  %v531_v17 = vsel %vm1933_vm0, %v515_v19, 4294967295  ;;  %vm663_vm8 = vcmp.lt.s32.totalorder %v1851_v18, 3 }
  0x55   : > { %544 = vperm.xlu0 %1401, %v523_v37   ;;  %v520_v37 = vadd.s32 6, %v1620_v51  ;;  %vm213_vm14 = vcmp.lt.s32.totalorder %v1928_v10, 5  ;;  %vm2561_vm0 = vcmp.ge.s32.totalorder %v1928_v10, 0  ;;  %vm486_vm6 = vcmp.lt.s32.totalorder %v1928_v10, 7 }
  0x57   : > { %741 = vperm.xlu1 %1384, %v706_v20   ;;  %v536_v20 = vsel %vm504_vm9, %v520_v37, 4294967295  ;;  %vm2555_vm9 = vmmov %vm2552_vm3  ;;  %v691_v37 = vadd.s32 13, %v1623_v53  ;;  %vm2558_vm3 = vcmp.ge.s32.totalorder %v1851_v18, 0 }
  0x58   : > { %vm1945_vm5 = vmand %vm2555_vm9, %vm659_vm13  ;;  %vm660_vm9 = vcmp.lt.s32.totalorder %v1664_v5, 3 }
  0x59   : > { %547 = vperm.xlu0 %1401, %v524_v61   ;;  %vm1956_vm12 = vmand %vm2558_vm3, %vm663_vm8  ;;  %vm484_vm8 = vcmp.lt.s32.totalorder %v1664_v5, 7  ;;  %v707_v53 = vsel %vm1945_vm5, %v691_v37, 4294967295  ;;  %vm662_vm5 = vcmp.lt.s32.totalorder %v1928_v10, 3 }
  0x5a   : > { %vm229_vm13 = vmand %vm2561_vm0, %vm213_vm14  ;;  %vm2562_vm14 = vcmp.ge.s32.totalorder %v1664_v5, 0 }
  0x5b   : > { %1385 = vset.pattern.permute.xlu1 %v1422_v56  ;;  %v245_v61 = vsel %vm229_vm13, %v1928_v10, 4294967295  ;;  %vm676_vm3 = vmand %vm2562_vm14, %vm660_vm9  ;;  %vm2564_vm13 = vcmp.ge.s32.totalorder %v1928_v10, 0 }
  0x5c   : > { %378 = vperm.xlu1 %1385, %v1469_v3   ;;  %vm2563_vm0 = vmmov %vm2562_vm14  ;;  %v708_v58 = vsel %vm676_vm3, %v692_v55, 4294967295 }
  0x5d   : > { %556 = vperm.xlu0 %1401, %v527_v28   ;;  %v1951_v28 = vadd.s32 13, %v1851_v18  ;;  %vm500_vm11 = vmand %vm2563_vm0, %vm484_vm8  ;;  %vm974_vm8 = vcmask 1041408  }
  0x5e   : > { %vm678_vm9 = vmand %vm2564_vm13, %vm662_vm5  ;;  %1292 = vmatprep.subr.msk.mxu0 %vm974_vm8, %v924_v16  ;;  %1322 = vmatprep.subr.msk.mxu1 %vm974_vm8, %v924_v16 }
  0x5f   : > { %v711_v19 = vsel %vm1956_vm12, %v1951_v28, 4294967295  ;;  %1293 = vmatpush3.msk.msra.mxu0 %vm974_vm8, %v924_v16  ;;  %1325 = vmatpush3.msk.msra.mxu1 %vm974_vm8, %v924_v16  ;;  %vm2567_vm14 = vmmov %vm2564_vm13  ;;  %vm2570_vm13 = vnez %v2523_v59  ;;  %vm2578_vm12 = vcmp.ge.s32.totalorder %v1620_v51, 0 }
  0x60   : > { %418 = vperm.xlu1 %1385, %v1639_v57   ;;  %vm502_vm3 = vmand %vm2567_vm14, %vm486_vm6  ;;  %vm2575_vm14 = vnez %v2549_v50  ;;  %v687_v50 = vadd.s32 13, %v1538_v29 }
  0x61   : > { %583 = vperm.xlu0 %1401, %v536_v20  }
  0x64   : > { %1386 = vset.pattern.permute.xlu1 %v1423_v43 }
  0x65   : > { %1406 = vset.pattern.permute.xlu0 %v1424_v60  ;;  %568 = vperm.xlu1 %1386, %v531_v17   ;;  %v516_v17 = vadd.s32 6, %v1664_v5  ;;  %v1425_v5 = vmov 4  }
  0x66   : > { %714 = vperm.xlu0 %1406, %v697_v63   ;;  %v694_v63 = vadd.s32 13, %v1928_v10 }
  0x67   : > { %v532_v62 = vsel %vm500_vm11, %v516_v17, 4294967295 }
  0x68   : > { %v710_v55 = vsel %vm678_vm9, %v694_v63, 4294967295 }
  0x69   : > { %1387 = vset.pattern.permute.xlu1 %v1421_v0 }
  0x6a   : > { %744 = vperm.xlu0 %1406, %v707_v53   ;;  %288 = vperm.xlu1 %1387, %v245_v61  }
  0x6e   : > { %747 = vperm.xlu0 %1406, %v708_v58   ;;  %1388 = vset.pattern.permute.xlu1 %v1423_v43 }
  0x6f   : > { %571 = vperm.xlu1 %1388, %v532_v62  }
  0x72   : > { %750 = vperm.xlu0 %1406, %v709_v22   ;;  %v518_v22 = vadd.s32 6, %v1928_v10 }
  0x73   : > { %1389 = vset.pattern.permute.xlu1 %v1425_v5 }
  0x74   : > { %859 = vperm.xlu1 %1389, %v1520_v24   ;;  %v923_v24 = vld [vmem:[%s2472_s1 + $0x8] sm:$0xff]  ;;  %v534_v31 = vsel %vm502_vm3, %v518_v22, 4294967295 }
  0x75   : > { %1294 = vmatprep.subr.mxu0 %v923_v24  ;;  %1323 = vmatprep.subr.mxu1 %v923_v24 }
  0x76   : > { %753 = vperm.xlu0 %1406, %v710_v55   ;;  %1295 = vmatpush3.msra.mxu0 %v923_v24 }
  0x77   : > { %1296 = vmatprep.subr.mxu0 %v922_v4  ;;  %1326 = vmatpush3.msra.mxu1 %v923_v24 }
  0x78   : > { %1390 = vset.pattern.permute.xlu1 %v1424_v60  ;;  %1297 = vmatpush3.msra.mxu0 %v922_v4 }
  0x79   : > { %720 = vperm.xlu1 %1390, %v699_v27   ;;  %1324 = vmatprep.subr.mxu1 %v922_v4 }
  0x7a   : > { %735 = vperm.xlu0 %1406, %v704_v34   ;;  %1327 = vmatpush3.msra.mxu1 %v922_v4  ;;  %v2066_v34 = vand.u32 127, %v163_v25 }
  0x7c   : > { %vm165_vm0 = vcmp.eq.s32.totalorder %v2066_v34, 17  ;;  %vm360_vm11 = vcmp.eq.s32.totalorder %v2066_v34, 5 }
  0x7d   : > { %1391 = vset.pattern.permute.xlu1 %v1425_v5 }
  0x7e   : > { %1410 = vset.pattern.permute.xlu0 %v1425_v5  ;;  %831 = vperm.xlu1 %1391, %v1475_v7  }
  0x7f   : > { %827 = vperm.xlu0 %1410, %v1466_v2  }
  0x82   : > { %863 = vperm.xlu1 %1391, %v1517_v23  }
  0x83   : > { %835 = vperm.xlu0 %1410, %v1463_v1   ;;  %v246_v1 = vsel %vm230_vm15, %v1851_v18, 4294967295 }
  0x86   : > { %1392 = vset.pattern.permute.xlu1 %v1422_v56 }
  0x87   : > { %423 = vperm.xlu1 %1392, %v1550_v33   ;;  %875 = vperm.xlu0 %1410, %v1550_v33  }
  0x8b   : > { %1393 = vset.pattern.permute.xlu1 %v1424_v60  ;;  %847 = vperm.xlu0 %1410, %v1478_v8  }
  0x8c   : > { %723 = vperm.xlu1 %1393, %v700_v40   ;;  %v1426_v40 = vmov 0.0  }
  0x8d   : > { %v2079_v42 = vsel %vm165_vm0, 1.0, %v1426_v40 }
  0x8f   : > { %883 = vperm.xlu0 %1410, %v1829_v52  }
  0x90   : > { %1394 = vset.pattern.permute.xlu1 %v1421_v0 }
  0x91   : > { %v2033_v2 = vpop.permute.xlu1 %255  ;;  %291 = vperm.xlu1 %1394, %v246_v1  }
  0x92   : > { %v250_v7 = vpop.permute.xlu0 %249 }
  0x95   : > { %v2035_v23 = vpop.permute.xlu1 %258  ;;  %1395 = vset.pattern.permute.xlu1 %v1422_v56 }
  0x96   : > { %388 = vperm.xlu1 %1395, %v1478_v8   ;;  %v2039_v33 = vpop.permute.xlu0 %252  ;;  %v2566_v8 = vsel %vm1762_vm2, %v1734_v36, 4294967295  ;;  %vm296_vm2 = vcmp.eq.s32.totalorder %v2066_v34, %v250_v7  ;;  %vm299_vm7 = vcmp.eq.s32.totalorder %v2066_v34, %v2035_v23  ;;  %v2576_v23 = vsel %vm2575_vm14, %v1906_v38, 4294967295 }
  0x97   : > { %v1206_v45 = vsel %vm296_vm2, 1.0, %v1426_v40  ;;  %v1209_v39 = vsel %vm299_vm7, 1.0, %v1426_v40  ;;  %vm825_vm14 = vcmp.eq.s32.totalorder %v2066_v34, 16 }
  0x98   : > { %v344_v46 = vadd.f32 %v1206_v45, %v2079_v42 }
  0x99   : > { %v2041_v6 = vpop.permute.xlu1 %264 }
  0x9a   : > { %1396 = vset.pattern.permute.xlu1 %v1423_v43  ;;  %v262_v11 = vpop.permute.xlu0 %261 }
  0x9b   : > { %550 = vperm.xlu1 %1396, %v525_v47   ;;  %vm300_vm9 = vcmp.eq.s32.totalorder %v2066_v34, %v262_v11 }
  0x9c   : > { %v1210_v62 = vsel %vm300_vm9, 1.0, %v1426_v40 }
  0x9d   : > { %v2048_v0 = vpop.permute.xlu1 %270  ;;  %v348_v55 = vadd.f32 %v1210_v62, %v2079_v42 }
  0x9e   : > { %v268_v12 = vpop.permute.xlu0 %267 }
  0x9f   : > { %574 = vperm.xlu1 %1396, %v2566_v8   ;;  %vm302_vm8 = vcmp.eq.s32.totalorder %v2066_v34, %v268_v12 }
  0xa0   : > { %v1212_v7 = vsel %vm302_vm8, 1.0, %v1426_v40 }
  0xa1   : > { %v2056_v26 = vpop.permute.xlu1 %276  ;;  %v350_v22 = vadd.f32 %v1212_v7, %v2079_v42 }
  0xa2   : > { %v2060_v27 = vpop.permute.xlu0 %273 }
  0xa3   : > { %553 = vperm.xlu1 %1396, %v2569_v30   ;;  %v2573_v30 = vsel %vm2572_vm1, %v1814_v32, 4294967295  ;;  %vm304_vm0 = vcmp.eq.s32.totalorder %v2066_v34, %v2060_v27  ;;  %v696_v27 = vadd.s32 13, %v1620_v51 }
  0xa6   : > { %v2068_v35 = vpop.permute.xlu1 %403  ;;  %v2070_v36 = vpop.permute.xlu0 %285 }
  0xa7   : > { %577 = vperm.xlu1 %1396, %v534_v31  }
  0xaa   : > { %v2075_v47 = vpop.permute.xlu0 %294 }
  0xab   : > { %v280_v48 = vpop.permute.xlu1 %279  ;;  %1398 = vset.pattern.permute.xlu1 %v1425_v5 }
  0xac   : > { %867 = vperm.xlu1 %1398, %v1592_v44   ;;  %vm306_vm5 = vcmp.eq.s32.totalorder %v2066_v34, %v280_v48  ;;  %v2571_v44 = vsel %vm2570_vm13, %v1768_v49, 4294967295  ;;  %vm297_vm13 = vcmp.eq.s32.totalorder %v2066_v34, %v2039_v33 }
  0xad   : > { %v1216_v17 = vsel %vm306_vm5, 1.0, %v1426_v40  ;;  %vm664_vm5 = vcmp.lt.s32.totalorder %v1620_v51, 3 }
  0xae   : > { %v354_v63 = vadd.f32 %v1216_v17, %v2079_v42  ;;  %vm2215_vm1 = vmand %vm2578_vm12, %vm664_vm5 }
  0xaf   : > { %v364_v18 = vpop.permute.xlu0 %363 }
  0xb0   : > { %v441_v10 = vsel %vm360_vm11, %v364_v18, 0.0  ;;  %v2086_v37 = vpop.permute.xlu1 %408  ;;  %1399 = vset.pattern.permute.xlu1 %v1424_v60 }
  0xb1   : > { %v2090_v53 = vadd.f32 %v441_v10, %v344_v46  ;;  %726 = vperm.xlu1 %1399, %v2571_v44  }
  0xb3   : > { %v2097_v61 = vpop.permute.xlu0 %368 }
  0xb5   : > { %v2100_v58 = vpop.permute.xlu1 %562  ;;  %1400 = vset.pattern.permute.xlu1 %v1425_v5 }
  0xb6   : > { %839 = vperm.xlu1 %1400, %v1469_v3   ;;  %vm593_vm8 = vcmp.eq.s32.totalorder %v2066_v34, %v2100_v58 }
  0xb7   : > { %v414_v59 = vpop.permute.xlu0 %413 }
  0xb8   : > { %v451_v49 = vsel %vm360_vm11, %v414_v59, 0.0 }
  0xb9   : > { %v2109_v16 = vadd.f32 %v451_v49, %v354_v63 }
  0xba   : > { %v283_v24 = vpop.permute.xlu1 %282  ;;  %871 = vperm.xlu1 %1400, %v1639_v57  }
  0xbb   : > { %v384_v4 = vpop.permute.xlu0 %383  ;;  %vm307_vm15 = vcmp.eq.s32.totalorder %v2066_v34, %v283_v24 }
  0xbc   : > { %v445_v1 = vsel %vm360_vm11, %v384_v4, 0.0 }
  0xbd   : > { %v2115_v3 = vadd.f32 %v445_v1, %v348_v55 }
  0xbe   : > { %1402 = vset.pattern.permute.xlu1 %v1422_v56 }
  0xbf   : > { %v2119_v11 = vpop.permute.xlu1 %565  ;;  %433 = vperm.xlu1 %1402, %v1829_v52   ;;  %v429_v8 = vpop.permute.xlu0 %428 }
  0xc0   : > { %v454_v28 = vsel %vm360_vm11, %v429_v8, 0.0  ;;  %v1207_v8 = vsel %vm297_vm13, 1.0, %v1426_v40 }
  0xc3   : > { %1403 = vset.pattern.permute.xlu1 %v1424_v60  ;;  %v394_v57 = vpop.permute.xlu0 %393 }
  0xc4   : > { %v447_v12 = vsel %vm360_vm11, %v394_v57, 0.0  ;;  %v2126_v25 = vpop.permute.xlu1 %738  ;;  %729 = vperm.xlu1 %1403, %v2573_v30  }
  0xc5   : > { %v463_v31 = vadd.f32 %v447_v12, %v350_v22  ;;  %vm769_vm7 = vcmp.eq.s32.totalorder %v2066_v34, %v2126_v25 }
  0xc6   : > { %v1246_v25 = vsel %vm769_vm7, 1.0, %v1426_v40  ;;  %vm308_vm7 = vcmp.eq.s32.totalorder %v2066_v34, %v2070_v36 }
  0xc8   : > { %v2132_v45 = vpop.permute.xlu0 %538  ;;  %1404 = vset.pattern.permute.xlu1 %v1422_v56  ;;  %v2574_v56 = vsel %vm1888_vm10, %v1884_v15, 4294967295  ;;  %vm655_vm10 = vcmp.lt.s32.totalorder %v1538_v29, 3  ;;  %v1217_v15 = vsel %vm307_vm15, 1.0, %v1426_v40 }
  0xc9   : > { %v2135_v52 = vpop.permute.xlu1 %373  ;;  %398 = vperm.xlu1 %1404, %v1487_v13   ;;  %vm671_vm2 = vmand %vm2577_vm4, %vm655_vm10  ;;  %v355_v59 = vadd.f32 %v1217_v15, %v2079_v42  ;;  %vm585_vm10 = vcmp.eq.s32.totalorder %v2066_v34, %v2132_v45  ;;  %vm925_vm4 = vcmask 146432  }
  0xca   : > { %v703_v22 = vsel %vm671_vm2, %v687_v50, 4294967295  ;;  %vm305_vm2 = vcmp.eq.s32.totalorder %v2066_v34, %v2056_v26 }
  0xcb   : > { %v1215_v26 = vsel %vm305_vm2, 1.0, %v1426_v40 }
  0xcc   : > { %v2138_v48 = vpop.permute.xlu0 %541 }
  0xcd   : > { %438 = vperm.xlu1 %1404, %v1580_v41  }
  0xce   : > { %v2141_v46 = vpop.permute.xlu1 %717 }
  0xcf   : > { %vm762_vm13 = vcmp.eq.s32.totalorder %v2066_v34, %v2141_v46 }
  0xd0   : > { %v2143_v18 = vpop.permute.xlu0 %544  ;;  %v1239_v46 = vsel %vm762_vm13, 1.0, %v1426_v40  ;;  %vm311_vm13 = vcmp.eq.s32.totalorder %v2066_v34, %v2075_v47 }
  0xd1   : > { %1405 = vset.pattern.permute.xlu1 %v1423_v43  ;;  %v347_v43 = vadd.f32 %v1209_v39, %v2079_v42 }
  0xd2   : > { %580 = vperm.xlu1 %1405, %v2574_v56   ;;  %v2152_v32 = vpop.permute.xlu1 %741 }
  0xd3   : > { %vm770_vm12 = vcmp.eq.s32.totalorder %v2066_v34, %v2152_v32 }
  0xd4   : > { %v548_v10 = vpop.permute.xlu0 %547 }
  0xd5   : > { %vm588_vm6 = vcmp.eq.s32.totalorder %v2066_v34, %v548_v10 }
  0xd6   : > { %559 = vperm.xlu1 %1405, %v2576_v23   ;;  %v1225_v44 = vsel %vm588_vm6, 1.0, %v1426_v40  ;;  %v712_v23 = vsel %vm2215_vm1, %v696_v27, 4294967295 }
  0xd7   : > { %v379_v54 = vpop.permute.xlu1 %378 }
  0xd8   : > { %v444_v17 = vsel %vm360_vm11, %v379_v54, 0.0  ;;  %v557_v62 = vpop.permute.xlu0 %556  ;;  %v345_v54 = vadd.f32 %v1207_v8, %v2079_v42 }
  0xd9   : > { %v460_v63 = vadd.f32 %v444_v17, %v347_v43  ;;  %vm591_vm3 = vcmp.eq.s32.totalorder %v2066_v34, %v557_v62  ;;  %v442_v62 = vsel %vm360_vm11, %v2097_v61, 0.0  ;;  %v1222_v61 = vsel %vm585_vm10, 1.0, %v1426_v40 }
  0xda   : > { %v1228_v38 = vsel %vm591_vm3, 1.0, %v1426_v40  ;;  %1407 = vset.pattern.permute.xlu1 %v1425_v5  ;;  %vm586_vm3 = vcmp.eq.s32.totalorder %v2066_v34, %v2138_v48 }
  0xdb   : > { %v2174_v49 = vadd.f32 %v1225_v44, %v460_v63  ;;  %v2176_v55 = vadd.f32 %v1228_v38, %v463_v31  ;;  %843 = vperm.xlu1 %1407, %v1481_v9   ;;  %v419_v24 = vpop.permute.xlu1 %418  ;;  %v1214_v9 = vsel %vm304_vm0, 1.0, %v1426_v40  ;;  %vm298_vm0 = vcmp.eq.s32.totalorder %v2066_v34, %v2033_v2 }
  0xdc   : > { %v452_v4 = vsel %vm360_vm11, %v419_v24, 0.0  ;;  %v2181_v1 = vpop.permute.xlu0 %583  ;;  %v352_v31 = vadd.f32 %v1214_v9, %v2079_v42  ;;  %v1223_v48 = vsel %vm586_vm3, 1.0, %v1426_v40  ;;  %v1208_v2 = vsel %vm298_vm0, 1.0, %v1426_v40 }
  0xdd   : > { %v468_v7 = vadd.f32 %v452_v4, %v355_v59  ;;  %v458_v59 = vadd.f32 %v442_v62, %v345_v54  ;;  %v633_v4 = vadd.f32 %v1222_v61, %v2090_v53  ;;  %v353_v53 = vadd.f32 %v1215_v26, %v2079_v42 }
  0xdf   : > { %1408 = vset.pattern.permute.xlu1 %v1424_v60 }
  0xe0   : > { %732 = vperm.xlu1 %1408, %v703_v22   ;;  %v2184_v29 = vpop.permute.xlu1 %568  ;;  %v634_v22 = vadd.f32 %v1223_v48, %v458_v59 }
  0xe1   : > { %v2188_v57 = vpop.permute.xlu0 %714  ;;  %vm595_vm10 = vcmp.eq.s32.totalorder %v2066_v34, %v2184_v29 }
  0xe2   : > { %vm761_vm5 = vcmp.eq.s32.totalorder %v2066_v34, %v2188_v57 }
  0xe4   : > { %756 = vperm.xlu1 %1408, %v711_v19   ;;  %v449_v19 = vsel %vm360_vm11, %v2068_v35, 0.0  ;;  %v1230_v35 = vsel %vm593_vm8, 1.0, %v1426_v40  ;;  %vm587_vm8 = vcmp.eq.s32.totalorder %v2066_v34, %v2143_v18  ;;  %v810_v18 = vadd.f32 %v1239_v46, %v634_v22 }
  0xe5   : > { %v2195_v12 = vpop.permute.xlu0 %744  ;;  %v289_v30 = vpop.permute.xlu1 %288  ;;  %v465_v51 = vadd.f32 %v449_v19, %v352_v31  ;;  %v1224_v31 = vsel %vm587_vm8, 1.0, %v1426_v40  ;;  %vm301_vm8 = vcmp.eq.s32.totalorder %v2066_v34, %v2041_v6 }
  0xe6   : > { %vm309_vm9 = vcmp.eq.s32.totalorder %v2066_v34, %v289_v30  ;;  %vm771_vm3 = vcmp.eq.s32.totalorder %v2066_v34, %v2195_v12 }
  0xe7   : > { %v1219_v20 = vsel %vm309_vm9, 1.0, %v1426_v40  ;;  %v641_v15 = vadd.f32 %v1230_v35, %v465_v51  ;;  %vm594_vm9 = vcmp.eq.s32.totalorder %v2066_v34, %v2119_v11  ;;  %v443_v11 = vsel %vm360_vm11, %v2135_v52, 0.0 }
  0xe8   : > { %v357_v33 = vadd.f32 %v1219_v20, %v2079_v42  ;;  %1409 = vset.pattern.permute.xlu1 %v1425_v5  ;;  %v1231_v9 = vsel %vm594_vm9, 1.0, %v1426_v40  ;;  %v1247_v52 = vsel %vm770_vm12, 1.0, %v1426_v40  ;;  %vm600_vm9 = vcmp.eq.s32.totalorder %v2066_v34, %v2181_v1 }
  0xe9   : > { %879 = vperm.xlu1 %1409, %v1803_v21   ;;  %v748_v58 = vpop.permute.xlu0 %747  ;;  %v817_v63 = vadd.f32 %v1246_v25, %v641_v15  ;;  %vm303_vm12 = vcmp.eq.s32.totalorder %v2066_v34, %v2048_v0  ;;  %v1237_v47 = vsel %vm600_vm9, 1.0, %v1426_v40  ;;  %vm1123_vm9 = vcmask 31744  }
  0xea   : > { %vm772_vm15 = vcmp.eq.s32.totalorder %v2066_v34, %v748_v58  ;;  %v572_v39 = vpop.permute.xlu1 %571  ;;  %v2225_v10 = vadd.f32 %v454_v28, %v357_v33 }
  0xeb   : > { %vm596_vm6 = vcmp.eq.s32.totalorder %v2066_v34, %v572_v39  ;;  %v1249_v21 = vsel %vm772_vm15, 1.0, %v1426_v40 }
  0xec   : > { %v1233_v43 = vsel %vm596_vm6, 1.0, %v1426_v40 }
  0xed   : > { %v644_v44 = vadd.f32 %v1233_v43, %v468_v7  ;;  %1411 = vset.pattern.permute.xlu1 %v1424_v60  ;;  %v2235_v17 = vpop.permute.xlu0 %750 }
  0xee   : > { %759 = vperm.xlu1 %1411, %v712_v23   ;;  %vm773_vm15 = vcmp.eq.s32.totalorder %v2066_v34, %v2235_v17  ;;  %v1232_v17 = vsel %vm595_vm10, 1.0, %v1426_v40 }
  0xef   : > { %v860_v50 = vpop.permute.xlu1 %859  ;;  %v2245_v38 = vadd.f32 %v1249_v21, %v644_v44  ;;  %v1250_v26 = vsel %vm773_vm15, 1.0, %v1426_v40  ;;  %v643_v29 = vadd.f32 %v1232_v17, %v2109_v16 }
  0xf0   : > { %v898_v60 = vsel %vm825_vm14, %v860_v50, 0.0  ;;  %v1218_v50 = vsel %vm308_vm7, 1.0, %v1426_v40 }
  0xf1   : > { %v2252_v24 = vpop.permute.xlu0 %753  ;;  %v914_v45 = vadd.f32 %v898_v60, %v817_v63  ;;  %v356_v61 = vadd.f32 %v1218_v50, %v2079_v42 }
  0xf2   : > { %1412 = vset.pattern.permute.xlu1 %v1425_v5  ;;  %v1238_v5 = vsel %vm761_vm5, 1.0, %v1426_v40  ;;  %vm774_vm2 = vcmp.eq.s32.totalorder %v2066_v34, %v2252_v24 }
  0xf3   : > { %851 = vperm.xlu1 %1412, %v1490_v14   ;;  %1310 = vmatprep.mubr.msk.f32.mxu1 %vm925_vm4, %v914_v45  ;;  %v450_v14 = vsel %vm360_vm11, %v2086_v37, 0.0  ;;  %v346_v37 = vadd.f32 %v1208_v2, %v2079_v42  ;;  %v809_v30 = vadd.f32 %v1238_v5, %v633_v4  ;;  %v1248_v5 = vsel %vm771_vm3, 1.0, %v1426_v40 }
  0xf4   : > { %v721_v7 = vpop.permute.xlu1 %720  ;;  %v466_v27 = vadd.f32 %v450_v14, %v353_v53  ;;  %v1251_v14 = vsel %vm774_vm2, 1.0, %v1426_v40 }
  0xf5   : > { %v2270_v57 = vpop.permute.xlu0 %735  ;;  %vm763_vm1 = vcmp.eq.s32.totalorder %v2066_v34, %v721_v7  ;;  %v459_v20 = vadd.f32 %v443_v11, %v346_v37  ;;  %v819_v11 = vadd.f32 %v1248_v5, %v643_v29 }
  0xf6   : > { %v1240_v33 = vsel %vm763_vm1, 1.0, %v1426_v40  ;;  %vm768_vm10 = vcmp.eq.s32.totalorder %v2066_v34, %v2270_v57 }
  0xf7   : > { %855 = vperm.xlu1 %1412, %v1487_v13   ;;  %v642_v13 = vadd.f32 %v1231_v9, %v466_v27  ;;  %v635_v8 = vadd.f32 %v1224_v31, %v459_v20 }
  0xf9   : > { %v832_v28 = vpop.permute.xlu1 %831  ;;  %v818_v39 = vadd.f32 %v1247_v52, %v642_v13  ;;  %v811_v23 = vadd.f32 %v1240_v33, %v635_v8 }
  0xfa   : > { %v891_v32 = vsel %vm825_vm14, %v832_v28, 0.0  ;;  %v828_v19 = vpop.permute.xlu0 %827 }
  0xfb   : > { %v907_v56 = vadd.f32 %v891_v32, %v810_v18  ;;  %v890_v58 = vsel %vm825_vm14, %v828_v19, 0.0  ;;  %887 = vperm.xlu1 %1412, %v1580_v41  }
  0xfc   : > { %v906_v35 = vadd.f32 %v890_v58, %v809_v30  ;;  %v1221_v58 = vsel %vm311_vm13, 1.0, %v1426_v40 }
  0xfd   : > { %v864_v51 = vpop.permute.xlu1 %863  ;;  %v359_v8 = vadd.f32 %v1221_v58, %v2079_v42 }
  0xfe   : > { %v899_v25 = vsel %vm825_vm14, %v864_v51, 0.0  ;;  %1298 = vmatprep.mubr.msk.f32.mxu0 %vm925_vm4, %v906_v35  ;;  %v836_v21 = vpop.permute.xlu0 %835  ;;  %v1211_v51 = vsel %vm301_vm8, 1.0, %v1426_v40 }
  0xff   : > { %v915_v43 = vadd.f32 %v899_v25, %v818_v39  ;;  %v892_v54 = vsel %vm825_vm14, %v836_v21, 0.0  ;;  %1299 = vmatmul.mubr.msk.f32.vlgmr.msra.gmra.mxu0 %vm925_vm4, %v907_v56  ;;  %v1213_v25 = vsel %vm303_vm12, 1.0, %v1426_v40  ;;  %v349_v0 = vadd.f32 %v1211_v51, %v2079_v42 }
 0x100   : > { %v908_v15 = vadd.f32 %v892_v54, %v811_v23 }
 0x101   : > { %1311 = vmatmul.mubr.msk.f32.vlgmr.msra.gmra.mxu1 %vm925_vm4, %v915_v43  ;;  %v351_v43 = vadd.f32 %v1213_v25, %v2079_v42 }
 0x102   : > { %1301 = vmatprep.mubr.msk.f32.mxu0 %vm925_vm4, %v908_v15  ;;  %v424_v41 = vpop.permute.xlu1 %423  ;;  %v876_v31 = vpop.permute.xlu0 %875 }
 0x103   : > { %v453_v59 = vsel %vm360_vm11, %v424_v41, 0.0  ;;  %v902_v20 = vsel %vm825_vm14, %v876_v31, 0.0 }
 0x104   : > { %v469_v48 = vadd.f32 %v453_v59, %v356_v61 }
 0x106   : > { %v848_v61 = vpop.permute.xlu0 %847 }
 0x107   : > { %v724_v44 = vpop.permute.xlu1 %723  ;;  %v895_v57 = vsel %vm825_vm14, %v848_v61, 0.0 }
 0x108   : > { %vm764_vm5 = vcmp.eq.s32.totalorder %v2066_v34, %v724_v44 }
 0x109   : > { %v1241_v27 = vsel %vm764_vm5, 1.0, %v1426_v40 }
 0x10a   : > { %v812_v18 = vadd.f32 %v1241_v27, %v2174_v49 }
 0x10c   : > { %v2304_v62 = vpop.permute.xlu1 %291 }
 0x10d   : > { %vm310_vm2 = vcmp.eq.s32.totalorder %v2066_v34, %v2304_v62 }
 0x111   : > { %v2306_v63 = vpop.permute.xlu1 %388 }
 0x112   : > { %v446_v6 = vsel %vm360_vm11, %v2306_v63, 0.0 }
 0x113   : > { %v462_v15 = vadd.f32 %v446_v6, %v349_v0 }
 0x116   : > { %v2311_v60 = vpop.permute.xlu1 %550 }
 0x117   : > { %vm589_vm7 = vcmp.eq.s32.totalorder %v2066_v34, %v2311_v60 }
 0x118   : > { %v1226_v41 = vsel %vm589_vm7, 1.0, %v1426_v40 }
 0x11a   : > { %v575_v45 = vpop.permute.xlu1 %574 }
 0x11b   : > { %vm597_vm6 = vcmp.eq.s32.totalorder %v2066_v34, %v575_v45 }
 0x11c   : > { %v1234_v36 = vsel %vm597_vm6, 1.0, %v1426_v40 }
 0x11d   : > { %v645_v4 = vadd.f32 %v1234_v36, %v469_v48  ;;  %v637_v48 = vadd.f32 %v1226_v41, %v2115_v3  ;;  %v1245_v36 = vsel %vm768_vm10, 1.0, %v1426_v40  ;;  %v1220_v3 = vsel %vm310_vm2, 1.0, %v1426_v40 }
 0x11e   : > { %v554_v7 = vpop.permute.xlu1 %553 }
 0x11f   : > { %v821_v2 = vadd.f32 %v1250_v26, %v645_v4  ;;  %vm590_vm1 = vcmp.eq.s32.totalorder %v2066_v34, %v554_v7 }
 0x120   : > { %v1227_v54 = vsel %vm590_vm1, 1.0, %v1426_v40 }
 0x121   : > { %v918_v13 = vadd.f32 %v902_v20, %v821_v2  ;;  %v638_v60 = vadd.f32 %v1227_v54, %v462_v15 }
 0x122   : > { %v578_v22 = vpop.permute.xlu1 %577 }
 0x123   : > { %vm598_vm0 = vcmp.eq.s32.totalorder %v2066_v34, %v578_v22 }
 0x124   : > { %v1235_v46 = vsel %vm598_vm0, 1.0, %v1426_v40 }
 0x125   : > { %v646_v53 = vadd.f32 %v1235_v46, %v2225_v10 }
 0x127   : > { %v868_v12 = vpop.permute.xlu1 %867  ;;  %v2334_v9 = vadd.f32 %v1251_v14, %v646_v53  ;;  %v358_v53 = vadd.f32 %v1220_v3, %v2079_v42 }
 0x128   : > { %v900_v24 = vsel %vm825_vm14, %v868_v12, 0.0 }
 0x129   : > { %v916_v37 = vadd.f32 %v900_v24, %v819_v11 }
 0x12b   : > { %1313 = vmatprep.mubr.msk.f32.mxu1 %vm925_vm4, %v916_v37 }
 0x12c   : > { %v727_v30 = vpop.permute.xlu1 %726 }
 0x12d   : > { %vm765_vm6 = vcmp.eq.s32.totalorder %v2066_v34, %v727_v30  ;;  %v884_v30 = vpop.permute.xlu0 %883 }
 0x12e   : > { %v1242_v59 = vsel %vm765_vm6, 1.0, %v1426_v40 }
 0x12f   : > { %v813_v7 = vadd.f32 %v1242_v59, %v637_v48 }
 0x131   : > { %v840_v16 = vpop.permute.xlu1 %839 }
 0x132   : > { %v893_v10 = vsel %vm825_vm14, %v840_v16, 0.0 }
 0x133   : > { %v909_v28 = vadd.f32 %v893_v10, %v812_v18  ;;  %v904_v18 = vsel %vm825_vm14, %v884_v30, 0.0 }
 0x135   : > { %v872_v52 = vpop.permute.xlu1 %871  ;;  %1302 = vmatmul.mubr.msk.f32.gmra.mxu0 %vm925_vm4, %v909_v28 }
 0x136   : > { %v901_v32 = vsel %vm825_vm14, %v872_v52, 0.0 }
 0x137   : > { %v917_v19 = vadd.f32 %v901_v32, %v2245_v38 }
 0x139   : > { %1314 = vmatmul.mubr.msk.f32.gmra.mxu1 %vm925_vm4, %v917_v19 }
 0x13a   : > { %v434_v49 = vpop.permute.xlu1 %433  ;;  %1316 = vmatprep.mubr.msk.f32.mxu1 %vm925_vm4, %v918_v13 }
 0x13b   : > { %v455_v29 = vsel %vm360_vm11, %v434_v49, 0.0 }
 0x13c   : > { %v471_v11 = vadd.f32 %v455_v29, %v358_v53 }
 0x13f   : > { %v730_v33 = vpop.permute.xlu1 %729 }
 0x140   : > { %vm766_vm15 = vcmp.eq.s32.totalorder %v2066_v34, %v730_v33 }
 0x141   : > { %v1243_v63 = vsel %vm766_vm15, 1.0, %v1426_v40 }
 0x142   : > { %v814_v4 = vadd.f32 %v1243_v63, %v638_v60 }
 0x144   : > { %v399_v56 = vpop.permute.xlu1 %398  ;;  %v911_v14 = vadd.f32 %v895_v57, %v814_v4 }
 0x145   : > { %v448_v21 = vsel %vm360_vm11, %v399_v56, 0.0 }
 0x146   : > { %v464_v50 = vadd.f32 %v448_v21, %v351_v43 }
 0x148   : > { %v439_v35 = vpop.permute.xlu1 %438 }
 0x149   : > { %v456_v38 = vsel %vm360_vm11, %v439_v35, 0.0 }
 0x14a   : > { %v472_v39 = vadd.f32 %v456_v38, %v359_v8 }
 0x14c   : > { %v2366_v23 = vadd.f32 %v1237_v47, %v472_v39 }
 0x14d   : > { %v581_v1 = vpop.permute.xlu1 %580 }
 0x14e   : > { %vm599_vm0 = vcmp.eq.s32.totalorder %v2066_v34, %v581_v1 }
 0x14f   : > { %v1236_v62 = vsel %vm599_vm0, 1.0, %v1426_v40 }
 0x150   : > { %v647_v24 = vadd.f32 %v1236_v62, %v471_v11 }
 0x151   : > { %v560_v44 = vpop.permute.xlu1 %559 }
 0x152   : > { %vm592_vm3 = vcmp.eq.s32.totalorder %v2066_v34, %v560_v44 }
 0x153   : > { %v1229_v45 = vsel %vm592_vm3, 1.0, %v1426_v40 }
 0x154   : > { %v640_v26 = vadd.f32 %v1229_v45, %v464_v50 }
 0x156   : > { %v844_v2 = vpop.permute.xlu1 %843  ;;  %v816_v17 = vadd.f32 %v1245_v36, %v640_v26 }
 0x157   : > { %v894_v22 = vsel %vm825_vm14, %v844_v2, 0.0 }
 0x158   : > { %v910_v5 = vadd.f32 %v894_v22, %v813_v7 }
 0x15a   : > { %1304 = vmatprep.mubr.msk.f32.mxu0 %vm925_vm4, %v910_v5 }
 0x15b   : > { %v733_v46 = vpop.permute.xlu1 %732  ;;  %1305 = vmatmul.mubr.msk.f32.gmra.mxu0 %vm925_vm4, %v911_v14 }
 0x15c   : > { %vm767_vm11 = vcmp.eq.s32.totalorder %v2066_v34, %v733_v46 }
 0x15d   : > { %v1244_v20 = vsel %vm767_vm11, 1.0, %v1426_v40 }
 0x15e   : > { %v815_v52 = vadd.f32 %v1244_v20, %v2176_v55 }
 0x15f   : > { %v757_v12 = vpop.permute.xlu1 %756 }
 0x160   : > { %vm775_vm5 = vcmp.eq.s32.totalorder %v2066_v34, %v757_v12 }
 0x161   : > { %v1252_v37 = vsel %vm775_vm5, 1.0, %v1426_v40 }
 0x162   : > { %v823_v27 = vadd.f32 %v1252_v37, %v647_v24 }
 0x164   : > { %v880_v16 = vpop.permute.xlu1 %879  ;;  %v920_v10 = vadd.f32 %v904_v18, %v823_v27 }
 0x165   : > { %v903_v31 = vsel %vm825_vm14, %v880_v16, 0.0 }
 0x166   : > { %v919_v42 = vadd.f32 %v903_v31, %v2334_v9 }
 0x168   : > { %1317 = vmatmul.mubr.msk.f32.gmra.mxu1 %vm925_vm4, %v919_v42 }
 0x169   : > { %v760_v28 = vpop.permute.xlu1 %759  ;;  %1319 = vmatprep.mubr.msk.f32.mxu1 %vm925_vm4, %v920_v10 }
 0x16a   : > { %vm776_vm13 = vcmp.eq.s32.totalorder %v2066_v34, %v760_v28 }
 0x16b   : > { %v1253_v49 = vsel %vm776_vm13, 1.0, %v1426_v40 }
 0x16c   : > { %v824_v58 = vadd.f32 %v1253_v49, %v2366_v23 }
 0x16e   : > { %v852_v32 = vpop.permute.xlu1 %851 }
 0x16f   : > { %v896_v19 = vsel %vm825_vm14, %v852_v32, 0.0 }
 0x170   : > { %v912_v9 = vadd.f32 %v896_v19, %v815_v52 }
 0x172   : > { %v856_v13 = vpop.permute.xlu1 %855  ;;  %1307 = vmatprep.mubr.msk.f32.mxu0 %vm925_vm4, %v912_v9 }
 0x173   : > { %v897_v33 = vsel %vm825_vm14, %v856_v13, 0.0 }
 0x174   : > { %v913_v56 = vadd.f32 %v897_v33, %v816_v17 }
 0x176   : > { %v888_v55 = vpop.permute.xlu1 %887  ;;  %1308 = vmatmul.mubr.msk.f32.gmra.mxu0 %vm925_vm4, %v913_v56 }
 0x177   : > { %v905_v8 = vsel %vm825_vm14, %v888_v55, 0.0 }
 0x178   : > { %v921_v35 = vadd.f32 %v905_v8, %v824_v58 }
 0x17a   : > { %1320 = vmatmul.mubr.msk.f32.gmra.mxu1 %vm925_vm4, %v921_v35 }
 0x1bf   : > { %v1300_v34 = vpop.f32.mrf.mxu0 }
 0x1c0   : > { %1125 = vst.msk [vmem:[%s2434_s24 + $0x8] sm:$0xff] %vm1123_vm9, %v1300_v34 }
 0x1c1   : > { %v1044_v40 = vpop.f32.mrf.mxu0  ;;  %v1312_v38 = vpop.f32.mrf.mxu1 }
 0x1c2   : > { %1124 = vst.msk [vmem:[%s2434_s24] sm:$0xff] %vm1123_vm9, %v1044_v40  ;;  %1133 = vst.msk [vmem:[%s2434_s24 + $0x48] sm:$0xff] %vm1123_vm9, %v1312_v38 }
 0x1c3   : > { %v1084_v39 = vpop.f32.mrf.mxu1 }
 0x1c4   : > { %1132 = vst.msk [vmem:[%s2434_s24 + $0x40] sm:$0xff] %vm1123_vm9, %v1084_v39 }
 0x1f5   : > { %v1303_v47 = vpop.f32.mrf.mxu0 }
 0x1f6   : > { %1127 = vst.msk [vmem:[%s2434_s24 + $0x18] sm:$0xff] %vm1123_vm9, %v1303_v47 }
 0x1f7   : > { %v1054_v51 = vpop.f32.mrf.mxu0 }
 0x1f8   : > { %1126 = vst.msk [vmem:[%s2434_s24 + $0x10] sm:$0xff] %vm1123_vm9, %v1054_v51 }
 0x1f9   : > { %v1315_v23 = vpop.f32.mrf.mxu1 }
 0x1fa   : > { %1135 = vst.msk [vmem:[%s2434_s24 + $0x58] sm:$0xff] %vm1123_vm9, %v1315_v23 }
 0x1fb   : > { %v1094_v25 = vpop.f32.mrf.mxu1 }
 0x1fc   : > { %1134 = vst.msk [vmem:[%s2434_s24 + $0x50] sm:$0xff] %vm1123_vm9, %v1094_v25 }
 0x21b   : > { %v1306_v1 = vpop.f32.mrf.mxu0 }
 0x21c   : > { %1129 = vst.msk [vmem:[%s2434_s24 + $0x28] sm:$0xff] %vm1123_vm9, %v1306_v1 }
 0x21d   : > { %v1064_v6 = vpop.f32.mrf.mxu0 }
 0x21e   : > { %1128 = vst.msk [vmem:[%s2434_s24 + $0x20] sm:$0xff] %vm1123_vm9, %v1064_v6 }
 0x228   : > { %v1318_v0 = vpop.f32.mrf.mxu1 }
 0x229   : > { %1137 = vst.msk [vmem:[%s2434_s24 + $0x68] sm:$0xff] %vm1123_vm9, %v1318_v0 }
 0x22a   : > { %v1104_v21 = vpop.f32.mrf.mxu1 }
 0x22b   : > { %1136 = vst.msk [vmem:[%s2434_s24 + $0x60] sm:$0xff] %vm1123_vm9, %v1104_v21 }
 0x236   : > { %v1309_v43 = vpop.f32.mrf.mxu0 }
 0x237   : > { %1131 = vst.msk [vmem:[%s2434_s24 + $0x38] sm:$0xff] %vm1123_vm9, %v1309_v43 }
 0x238   : > { %v1074_v54 = vpop.f32.mrf.mxu0 }
 0x239   : > { %1130 = vst.msk [vmem:[%s2434_s24 + $0x30] sm:$0xff] %vm1123_vm9, %v1074_v54 }
 0x23a   : > { %v1321_v15 = vpop.f32.mrf.mxu1 }
 0x23b   : > { %1139 = vst.msk [vmem:[%s2434_s24 + $0x78] sm:$0xff] %vm1123_vm9, %v1321_v15 }
 0x23c   : > { %v1114_v41 = vpop.f32.mrf.mxu1 }
 0x23d   : > { %1138 = vst.msk [vmem:[%s2434_s24 + $0x70] sm:$0xff] %vm1123_vm9, %v1114_v41 }
 0x23e PF: > { %s12_s9 = sadd.s32 1, %s1419_s9  }
 0x23f   : > { %p9_p4 = scmp.ge.s32.totalorder %s12_s9, 4  }
 0x241   :  { %11 = sbr.rel (!%p9_p4) target bundleno = 1 (0x1), region = 58 }

</bundles_post_ra>
